<compile_context>
chip_gen: v7x
topology: tpu7x:2x2x1
jax: 0.10.0
libtpu: 0.0.40
codegen_flags: <defaults>
</compile_context>

<pallas_src>
import jax
import jax.numpy as jnp
import numpy as np
from jax.experimental import pallas as pl
from jax.experimental.pallas import tpu as pltpu


# Finite "-inf": with sequence tiling, a true -inf would turn a fully-masked tile
# into NaN (exp(-inf - -inf)); -1e30 underflows to exactly 0 weight after softmax.
_NEG_BIG = -1e30


def _round_up(a, m):
    return ((a + m - 1) // m) * m


def mqa_kernel(x_ref, bias_ref, w_ref, b_ref, o_ref, m_sc, l_sc, acc_sc):
    """One grid step = (batch tile, sequence tile); online softmax over S.

    x_ref    (BT, TS, H)  bf16   sequence tile of the hidden states
    bias_ref (BT, TS, 1)  f32    additive mask bias (0 or -1e30)
    w_ref    (H, F)       bf16   stacked query weights, pre-transposed
    b_ref    (1, F)       f32    stacked query biases
    o_ref    (BT, F, H)   f32    output block (resident across the S axis)
    m_sc/l_sc (BT, F, 1)  f32    running max / running sum
    acc_sc   (BT, F, H)   f32    running weighted sum of x
    """
    si = pl.program_id(1)

    @pl.when(si == 0)
    def _init():
        m_sc[...] = jnp.full_like(m_sc, -jnp.inf)
        l_sc[...] = jnp.zeros_like(l_sc)
        acc_sc[...] = jnp.zeros_like(acc_sc)

    bt = x_ref.shape[0]
    w = w_ref[...]          # (H, F) bf16
    b = b_ref[...]          # (1, F) f32

    for i in range(bt):     # static, small batch tile -> all per-row ops stay 2D
        x = x_ref[i]        # (TS, H) bf16
        # Contract x on its last (lane) dim: natural MXU layout, no transpose of x.
        s_tf = jnp.dot(x, w, preferred_element_type=jnp.float32)    # (TS, F)
        s_tf = s_tf + bias_ref[i] + b                                # mask + query bias
        scores = s_tf.T     # tiny (TS,F)->(F,TS) transpose; softmax reduces on lanes

        m_prev = m_sc[i]                                             # (F, 1)
        m_new = jnp.maximum(m_prev, jnp.max(scores, axis=-1, keepdims=True))
        alpha = jnp.exp(m_prev - m_new)                              # (F, 1)
        p = jnp.exp(scores - m_new)                                  # (F, TS) f32
        l_sc[i] = alpha * l_sc[i] + jnp.sum(p, axis=-1, keepdims=True)
        acc_sc[i] = alpha * acc_sc[i] + jnp.dot(
            p.astype(x.dtype), x, preferred_element_type=jnp.float32)  # (F, H)
        m_sc[i] = m_new

    @pl.when(si == pl.num_programs(1) - 1)
    def _finalize():
        inv_l = pl.reciprocal(l_sc[...], approx=True)                # EUP, frees VALU
        # Single full-block, lane-dense store of the whole (BT, F, H) slab.
        o_ref[...] = (acc_sc[...] * inv_l).astype(o_ref.dtype)


def multi_query_attention(x, attention_mask, w, b, *, seq_tile=1024):
    """x: (B, S, H), attention_mask: (B, S), w: (F, H), b: (F, 1) -> (B, F, H) f32."""
    B, S, H = x.shape
    F = w.shape[0]

    # ---- tile sizing -------------------------------------------------------
    # Sequence tile: multiple of 8 sublanes, sized so the bf16 x tile stays
    # ~<= 4 MiB per buffer (double-buffered it fits v7x's 64 MiB VMEM easily).
    bytes_per_row = H * 2  # bf16
    ts_cap = max(8, min(seq_tile, (4 << 20) // max(1, bytes_per_row)))
    ts_cap = max(8, (ts_cap // 8) * 8)
    TS = min(_round_up(S, 8), ts_cap)
    S_pad = _round_up(S, TS)

    # Batch tile: amortize the ~0.35us/step overhead when S*H is tiny, but keep
    # >= 2 steps on the parallel axis so both v7x TensorCores stay busy.
    # TODO(synk): when B < 4 and S*H is tiny, per-step DMAs stay small; splitting
    # the S axis across cores instead is not implemented here.
    per_b_bytes = TS * bytes_per_row + TS * 4
    BT = 1
    for cand in range(2, min(B, 8) + 1):
        if B % cand:
            continue
        if B // cand < 2:
            break
        if cand * per_b_bytes > (4 << 20):
            break
        BT = cand
        if BT * per_b_bytes >= (512 << 10):
            break

    # ---- operand preparation (cheap, one-time, outside the kernel) ----------
    w_hf = jnp.asarray(w).astype(jnp.bfloat16).T          # (H, F): x never transposed
    b_1f = jnp.asarray(b).astype(jnp.float32).reshape(1, F)
    bias = jnp.where(attention_mask == 0, _NEG_BIG, 0.0).astype(jnp.float32)  # (B, S)
    if S_pad != S:
        x = jnp.pad(x, ((0, 0), (0, S_pad - S), (0, 0)))
        bias = jnp.pad(bias, ((0, 0), (0, S_pad - S)), constant_values=_NEG_BIG)
    x_bf = x.astype(jnp.bfloat16)        # halve HBM traffic; MXU runs bf16 x f32-acc
    bias = bias[:, :, None]              # (B, S_pad, 1)

    grid = (B // BT, S_pad // TS)
    cost = pl.CostEstimate(
        flops=4 * B * F * S_pad * H,
        transcendentals=2 * B * F * S_pad,
        bytes_accessed=(B * S_pad * H * 2 + B * S_pad * 4
                        + B * F * H * 4 + H * F * 2 + F * 4),
    )

    # TODO(synk): for v5e lane-density, H should ideally be padded to a multiple
    # of 128 in the wrapper; skipped to keep the output shape identical to PyTorch.
    return pl.pallas_call(
        mqa_kernel,
        out_shape=jax.ShapeDtypeStruct((B, F, H), jnp.float32),
        grid_spec=pltpu.PrefetchScalarGridSpec(
            num_scalar_prefetch=0,
            grid=grid,
            in_specs=[
                pl.BlockSpec((BT, TS, H), lambda bi, si: (bi, si, 0)),  # x tile
                pl.BlockSpec((BT, TS, 1), lambda bi, si: (bi, si, 0)),  # mask bias
                pl.BlockSpec((H, F), lambda bi, si: (0, 0)),            # shared W^T
                pl.BlockSpec((1, F), lambda bi, si: (0, 0)),            # shared bias
            ],
            out_specs=pl.BlockSpec((BT, F, H), lambda bi, si: (bi, 0, 0)),
            scratch_shapes=[
                pltpu.VMEM((BT, F, 1), jnp.float32),   # running max
                pltpu.VMEM((BT, F, 1), jnp.float32),   # running sum
                pltpu.VMEM((BT, F, H), jnp.float32),   # output accumulator
            ],
        ),
        compiler_params=pltpu.CompilerParams(
            dimension_semantics=("parallel", "arbitrary"),
            vmem_limit_bytes=48 * 1024 * 1024,
        ),
        cost_estimate=cost,
    )(x_bf, bias, w_hf, b_1f)


def reference(x, attention_mask, w, b):
    # Pure-JAX reference mirroring the PyTorch forward exactly (f32, true -inf mask).
    scores = jnp.einsum("bsh,fh->bfs", x, w) + b[None, :, :]          # (B, F, S)
    scores = jnp.where(attention_mask[:, None, :] == 0, -jnp.inf, scores)
    weights = jax.nn.softmax(scores, axis=-1)
    return jnp.einsum("bfs,bsh->bfh", weights, x)                      # (B, F, H)


if __name__ == "__main__":
    batch, seq, hidden, max_fragments = 2, 8, 32, 4

    key = jax.random.PRNGKey(0)
    kx, kw, kb = jax.random.split(key, 3)

    x = jax.random.normal(kx, (batch, seq, hidden), dtype=jnp.float32)

    # attention_mask: 1 = keep, 0 = masked (second sequence only 5 valid tokens)
    lengths = jnp.array([seq, 5], dtype=jnp.int32)
    attention_mask = (jnp.arange(seq)[None, :] < lengths[:, None]).astype(jnp.float32)

    # One Linear(hidden, 1) per fragment, stacked into W (F, H) and bias (F, 1).
    w = jax.random.normal(kw, (max_fragments, hidden), dtype=jnp.float32) * 0.1
    b = jax.random.normal(kb, (max_fragments, 1), dtype=jnp.float32) * 0.1

    out = multi_query_attention(x, attention_mask, w, b)
    out = jax.block_until_ready(out)

    ref = reference(x, attention_mask, w, b)
    assert out.shape == (batch, max_fragments, hidden), out.shape
    # bf16 x/W on the MXU -> slightly loosened tolerance vs. the f32 reference.
    np.testing.assert_allclose(np.asarray(out), np.asarray(ref), rtol=3e-2, atol=3e-2)

    print("KERNEL_OK")
</pallas_src>

<mosaic_0001>
module attributes {stable_mosaic.version = 11 : i64} {
  func.func @mqa_kernel(%arg0: i32, %arg1: i32, %arg2: memref<1x8x32xbf16, #tpu.memory_space<vmem>>, %arg3: memref<1x8x1xf32, #tpu.memory_space<vmem>>, %arg4: memref<32x4xbf16, #tpu.memory_space<vmem>>, %arg5: memref<1x4xf32, #tpu.memory_space<vmem>>, %arg6: memref<1x4x32xf32, #tpu.memory_space<vmem>>, %arg7: memref<1x4x1xf32, #tpu.memory_space<vmem>>, %arg8: memref<1x4x1xf32, #tpu.memory_space<vmem>>, %arg9: memref<1x4x32xf32, #tpu.memory_space<vmem>>) attributes {dimension_semantics = [#tpu.dimension_semantics<parallel>, #tpu.dimension_semantics<arbitrary>], iteration_bounds = array<i64: 2, 1>, scalar_prefetch = 0 : i64, scratch_operands = 3 : i64, tpu.core_type = #tpu.core_type<tc>, window_params = [{transform_indices = @transform_0, window_bounds = array<i64: 1, 8, 32>}, {transform_indices = @transform_1, window_bounds = array<i64: 1, 8, 1>}, {pipeline_mode = #tpu.pipeline_mode<synchronous>, transform_indices = @transform_2, window_bounds = array<i64: 32, 4>}, {pipeline_mode = #tpu.pipeline_mode<synchronous>, transform_indices = @transform_3, window_bounds = array<i64: 1, 4>}, {transform_indices = @transform_4, window_bounds = array<i64: 1, 4, 32>}]} {
    %c0_i32 = arith.constant 0 : i32
    %0 = arith.cmpi eq, %arg1, %c0_i32 : i32
    %1 = arith.extui %0 : i1 to i32
    %c0_i32_0 = arith.constant 0 : i32
    %2 = arith.cmpi ne, %1, %c0_i32_0 : i32
    scf.if %2 {
      %cst_33 = arith.constant 0xFF800000 : f32
      %50 = vector.broadcast %cst_33 : f32 to vector<1x4x1xf32>
      %c0_34 = arith.constant 0 : index
      %c0_35 = arith.constant 0 : index
      %c0_36 = arith.constant 0 : index
      %51 = vector.load %arg7[%c0_34, %c0_35, %c0_36] : memref<1x4x1xf32, #tpu.memory_space<vmem>>, vector<1x4x1xf32>
      tpu.vector_store %arg7[%c0_34, %c0_35, %c0_36], %50 {strides = array<i32>} : memref<1x4x1xf32, #tpu.memory_space<vmem>>, vector<1x4x1xf32>,
      %cst_37 = arith.constant 0.000000e+00 : f32
      %52 = vector.broadcast %cst_37 : f32 to vector<1x4x1xf32>
      %c0_38 = arith.constant 0 : index
      %c0_39 = arith.constant 0 : index
      %c0_40 = arith.constant 0 : index
      %53 = vector.load %arg8[%c0_38, %c0_39, %c0_40] : memref<1x4x1xf32, #tpu.memory_space<vmem>>, vector<1x4x1xf32>
      tpu.vector_store %arg8[%c0_38, %c0_39, %c0_40], %52 {strides = array<i32>} : memref<1x4x1xf32, #tpu.memory_space<vmem>>, vector<1x4x1xf32>,
      %cst_41 = arith.constant 0.000000e+00 : f32
      %54 = vector.broadcast %cst_41 : f32 to vector<1x4x32xf32>
      %c0_42 = arith.constant 0 : index
      %c0_43 = arith.constant 0 : index
      %c0_44 = arith.constant 0 : index
      %55 = vector.load %arg9[%c0_42, %c0_43, %c0_44] : memref<1x4x32xf32, #tpu.memory_space<vmem>>, vector<1x4x32xf32>
      tpu.vector_store %arg9[%c0_42, %c0_43, %c0_44], %54 {strides = array<i32>} : memref<1x4x32xf32, #tpu.memory_space<vmem>>, vector<1x4x32xf32>,
    } else {
    }
    %c0 = arith.constant 0 : index
    %c0_1 = arith.constant 0 : index
    %3 = vector.load %arg4[%c0, %c0_1] : memref<32x4xbf16, #tpu.memory_space<vmem>>, vector<32x4xbf16>
    %c0_2 = arith.constant 0 : index
    %c0_3 = arith.constant 0 : index
    %4 = vector.load %arg5[%c0_2, %c0_3] : memref<1x4xf32, #tpu.memory_space<vmem>>, vector<1x4xf32>
    %c0_4 = arith.constant 0 : index
    %c0_5 = arith.constant 0 : index
    %c0_6 = arith.constant 0 : index
    %5 = vector.load %arg2[%c0_4, %c0_5, %c0_6] : memref<1x8x32xbf16, #tpu.memory_space<vmem>>, vector<1x8x32xbf16>
    %6 = vector.shape_cast %5 : vector<1x8x32xbf16> to vector<8x32xbf16>
    %cst = arith.constant dense<0.000000e+00> : vector<8x4xf32>
    %7 = tpu.matmul %6, %3, %cst {dimension_numbers = #tpu.dot_dimension_numbers<[1], [0], [0], [1], [0, 0, 1, 1], [], []>} : vector<8x32xbf16>, vector<32x4xbf16>, vector<8x4xf32> -> vector<8x4xf32>
    %c0_7 = arith.constant 0 : index
    %c0_8 = arith.constant 0 : index
    %c0_9 = arith.constant 0 : index
    %8 = vector.load %arg3[%c0_7, %c0_8, %c0_9] : memref<1x8x1xf32, #tpu.memory_space<vmem>>, vector<1x8x1xf32>
    %9 = vector.shape_cast %8 : vector<1x8x1xf32> to vector<8x1xf32>
    %10 = vector.broadcast %9 : vector<8x1xf32> to vector<8x4xf32>
    %11 = arith.addf %7, %10 : vector<8x4xf32>
    %12 = vector.broadcast %4 : vector<1x4xf32> to vector<8x4xf32>
    %13 = arith.addf %11, %12 : vector<8x4xf32>
    %14 = tpu.transpose %13, [1, 0] : vector<8x4xf32> -> vector<4x8xf32>
    %c0_10 = arith.constant 0 : index
    %c0_11 = arith.constant 0 : index
    %c0_12 = arith.constant 0 : index
    %15 = vector.load %arg7[%c0_10, %c0_11, %c0_12] : memref<1x4x1xf32, #tpu.memory_space<vmem>>, vector<1x4x1xf32>
    %16 = vector.shape_cast %15 : vector<1x4x1xf32> to vector<4x1xf32>
    %cst_13 = arith.constant dense<0xFF800000> : vector<4xf32>
    %17 = vector.multi_reduction <maximumf>, %14, %cst_13 [1] : vector<4x8xf32> to vector<4xf32>
    %18 = vector.shape_cast %17 : vector<4xf32> to vector<4x1xf32>
    %19 = arith.maximumf %16, %18 : vector<4x1xf32>
    %20 = arith.subf %16, %19 : vector<4x1xf32>
    %21 = math.exp %20 : vector<4x1xf32>
    %22 = vector.broadcast %19 : vector<4x1xf32> to vector<4x8xf32>
    %23 = arith.subf %14, %22 : vector<4x8xf32>
    %24 = math.exp %23 : vector<4x8xf32>
    %c0_14 = arith.constant 0 : index
    %c0_15 = arith.constant 0 : index
    %c0_16 = arith.constant 0 : index
    %25 = vector.load %arg8[%c0_14, %c0_15, %c0_16] : memref<1x4x1xf32, #tpu.memory_space<vmem>>, vector<1x4x1xf32>
    %26 = vector.shape_cast %25 : vector<1x4x1xf32> to vector<4x1xf32>
    %27 = arith.mulf %21, %26 : vector<4x1xf32>
    %cst_17 = arith.constant dense<0.000000e+00> : vector<4xf32>
    %28 = vector.multi_reduction <add>, %24, %cst_17 [1] : vector<4x8xf32> to vector<4xf32>
    %29 = vector.shape_cast %28 : vector<4xf32> to vector<4x1xf32>
    %30 = arith.addf %27, %29 : vector<4x1xf32>
    %c0_18 = arith.constant 0 : index
    %c0_19 = arith.constant 0 : index
    %c0_20 = arith.constant 0 : index
    %31 = vector.load %arg8[%c0_18, %c0_19, %c0_20] : memref<1x4x1xf32, #tpu.memory_space<vmem>>, vector<1x4x1xf32>
    %32 = vector.shape_cast %31 : vector<1x4x1xf32> to vector<4x1xf32>
    %33 = vector.shape_cast %30 : vector<4x1xf32> to vector<1x4x1xf32>
    tpu.vector_store %arg8[%c0_18, %c0_19, %c0_20], %33 {strides = array<i32>} : memref<1x4x1xf32, #tpu.memory_space<vmem>>, vector<1x4x1xf32>,
    %c0_21 = arith.constant 0 : index
    %c0_22 = arith.constant 0 : index
    %c0_23 = arith.constant 0 : index
    %34 = vector.load %arg9[%c0_21, %c0_22, %c0_23] : memref<1x4x32xf32, #tpu.memory_space<vmem>>, vector<1x4x32xf32>
    %35 = vector.shape_cast %34 : vector<1x4x32xf32> to vector<4x32xf32>
    %36 = vector.broadcast %21 : vector<4x1xf32> to vector<4x32xf32>
    %37 = arith.mulf %36, %35 : vector<4x32xf32>
    %38 = arith.truncf %24 : vector<4x8xf32> to vector<4x8xbf16>
    %cst_24 = arith.constant dense<0.000000e+00> : vector<4x32xf32>
    %39 = tpu.matmul %38, %6, %cst_24 {dimension_numbers = #tpu.dot_dimension_numbers<[1], [0], [0], [1], [0, 0, 1, 1], [], []>} : vector<4x8xbf16>, vector<8x32xbf16>, vector<4x32xf32> -> vector<4x32xf32>
    %40 = arith.addf %37, %39 : vector<4x32xf32>
    %c0_25 = arith.constant 0 : index
    %c0_26 = arith.constant 0 : index
    %c0_27 = arith.constant 0 : index
    %41 = vector.load %arg9[%c0_25, %c0_26, %c0_27] : memref<1x4x32xf32, #tpu.memory_space<vmem>>, vector<1x4x32xf32>
    %42 = vector.shape_cast %41 : vector<1x4x32xf32> to vector<4x32xf32>
    %43 = vector.shape_cast %40 : vector<4x32xf32> to vector<1x4x32xf32>
    tpu.vector_store %arg9[%c0_25, %c0_26, %c0_27], %43 {strides = array<i32>} : memref<1x4x32xf32, #tpu.memory_space<vmem>>, vector<1x4x32xf32>,
    %c0_28 = arith.constant 0 : index
    %c0_29 = arith.constant 0 : index
    %c0_30 = arith.constant 0 : index
    %44 = vector.load %arg7[%c0_28, %c0_29, %c0_30] : memref<1x4x1xf32, #tpu.memory_space<vmem>>, vector<1x4x1xf32>
    %45 = vector.shape_cast %44 : vector<1x4x1xf32> to vector<4x1xf32>
    %46 = vector.shape_cast %19 : vector<4x1xf32> to vector<1x4x1xf32>
    tpu.vector_store %arg7[%c0_28, %c0_29, %c0_30], %46 {strides = array<i32>} : memref<1x4x1xf32, #tpu.memory_space<vmem>>, vector<1x4x1xf32>,
    %c0_i32_31 = arith.constant 0 : i32
    %47 = arith.cmpi eq, %arg1, %c0_i32_31 : i32
    %48 = arith.extui %47 : i1 to i32
    %c0_i32_32 = arith.constant 0 : i32
    %49 = arith.cmpi ne, %48, %c0_i32_32 : i32
    scf.if %49 {
      %c0_33 = arith.constant 0 : index
      %c0_34 = arith.constant 0 : index
      %c0_35 = arith.constant 0 : index
      %50 = vector.load %arg8[%c0_33, %c0_34, %c0_35] : memref<1x4x1xf32, #tpu.memory_space<vmem>>, vector<1x4x1xf32>
      %51 = tpu.reciprocal %50 {approx = true} : vector<1x4x1xf32> -> vector<1x4x1xf32>
      %c0_36 = arith.constant 0 : index
      %c0_37 = arith.constant 0 : index
      %c0_38 = arith.constant 0 : index
      %52 = vector.load %arg9[%c0_36, %c0_37, %c0_38] : memref<1x4x32xf32, #tpu.memory_space<vmem>>, vector<1x4x32xf32>
      %53 = vector.broadcast %51 : vector<1x4x1xf32> to vector<1x4x32xf32>
      %54 = arith.mulf %52, %53 : vector<1x4x32xf32>
      %c0_39 = arith.constant 0 : index
      %c0_40 = arith.constant 0 : index
      %c0_41 = arith.constant 0 : index
      %55 = vector.load %arg6[%c0_39, %c0_40, %c0_41] : memref<1x4x32xf32, #tpu.memory_space<vmem>>, vector<1x4x32xf32>
      tpu.vector_store %arg6[%c0_39, %c0_40, %c0_41], %54 {strides = array<i32>} : memref<1x4x32xf32, #tpu.memory_space<vmem>>, vector<1x4x32xf32>,
    } else {
    }
    return
  }
  func.func @transform_0(%arg0: i32, %arg1: i32) -> (i32, i32, i32) {
    %c0_i32 = arith.constant 0 : i32
    %c0_i32_0 = arith.constant 0 : i32
    return %arg0, %arg1, %c0_i32 : i32, i32, i32
  }
  func.func @transform_1(%arg0: i32, %arg1: i32) -> (i32, i32, i32) {
    %c0_i32 = arith.constant 0 : i32
    %c0_i32_0 = arith.constant 0 : i32
    return %arg0, %arg1, %c0_i32 : i32, i32, i32
  }
  func.func @transform_2(%arg0: i32, %arg1: i32) -> (i32, i32) {
    %c0_i32 = arith.constant 0 : i32
    %c0_i32_0 = arith.constant 0 : i32
    %c0_i32_1 = arith.constant 0 : i32
    return %c0_i32, %c0_i32_0 : i32, i32
  }
  func.func @transform_3(%arg0: i32, %arg1: i32) -> (i32, i32) {
    %c0_i32 = arith.constant 0 : i32
    %c0_i32_0 = arith.constant 0 : i32
    %c0_i32_1 = arith.constant 0 : i32
    return %c0_i32, %c0_i32_0 : i32, i32
  }
  func.func @transform_4(%arg0: i32, %arg1: i32) -> (i32, i32, i32) {
    %c0_i32 = arith.constant 0 : i32
    %c0_i32_0 = arith.constant 0 : i32
    %c0_i32_1 = arith.constant 0 : i32
    return %arg0, %c0_i32, %c0_i32_0 : i32, i32, i32
  }
}

</mosaic_0001>

<bundles_post_ra>
// kernel: tpu_custom_call.1
= control target key start
LH: loop header
LB: loop body
LE: loop exit
PB: predicated region body
PF: predicated region fallthrough
CT: control target
= control target key end

     0   :  { %9 = vsyncpa [#allocation6], 0  ;;  %s905_s0 = inlined_call_operand.vmem [shape: bf16[2,8,32], index: 0, kind: input, shape index: {}]   ;;  %s906_s1 = inlined_call_operand.vmem [shape: f32[2,8,1], index: 1, kind: input, shape index: {}]   ;;  %s907_s2 = inlined_call_operand.vmem [shape: bf16[32,4], index: 2, kind: input, shape index: {}]   ;;  %s908_s3 = inlined_call_operand.vmem [shape: f32[1,4], index: 3, kind: input, shape index: {}]   ;;  %s909_s4 = inlined_call_operand.hbm [shape: f32[2,4,32], index: 4, kind: output, shape index: {}]  }
   0x1   :  { %11 = vsyncpa [#allocation6 + $0x1], 0  ;;  %s772_s15 = smov 0   ;;  %s774_s16 = smov 0  }
   0x2   :  { %s776_s17 = smov 0   ;;  %s778_s18 = smov 0  }
   0x3   :  { %s780_s19 = smov 0   ;;  %s782_s20 = smov 0  }
   0x4 LB: > { %s557_s21 = sadd.s32 4294967295, %s740_s20   ;;  %s558_s22 = sadd.s32 4294967294, %s740_s20   ;;  %s740_s20 = sphi %s782_s20, %s17_s20   ;;  %s736_s19 = sphi %s780_s19, %s916_s19   ;;  %s732_s18 = sphi %s778_s18, %s915_s18   ;;  %s728_s17 = sphi %s776_s17, %s914_s17   ;;  %s724_s16 = sphi %s774_s16, %s913_s16   ;;  %s720_s15 = sphi %s772_s15, %s912_s15  }
   0x5   : > { %s29_s23 = sadd.s32 1, %s736_s19  ;;  %s134_s24 = sadd.s32 1, %s728_s17 }
   0x6   : > { %p31_p0 = scmp.ge.s32.totalorder %s29_s23, 2  ;;  %p144_p1 = scmp.ne.s32.totalorder %s728_s17, %s724_s16 }
   0x7   : > { %p145_p2 = scmp.eq.s32.totalorder %s557_s21, 1  ;;  %p150_p3 = scmp.ne.s32.totalorder %s724_s16, %s720_s15 }
   0x8   : > { %s918_s23 = smov (%p31_p0, %s29_s23), 0  ;;  %p151_p5 = scmp.eq.s32.totalorder %s558_s22, 1 }
   0x9   : > { %p812_p4 = por %p145_p2, %p144_p1  ;;  %s131_s26 = ssub.s32 %s736_s19, %s918_s23 }
   0xa   : > { %p561_p6 = scmp.ge.s32.totalorder %s740_s20, 1  ;;  %p132_p7 = scmp.eq.s32.totalorder %s131_s26, 0 }
   0xb   : > { %p819_p8 = por %p151_p5, %p150_p3  ;;  %p195_p9 = scmp.lt.s32.totalorder %s740_s20, 3 }
   0xc   : > { %s825_s28 = scalar_select %p132_p7, %s728_s17, %s134_s24  }
   0xd   : > { %p196_p10 = pnand %p561_p6, %p195_p9 }
   0xe   : > { %v654_v0 = vld [vmem:[%s907_s2] sm:$0xff] (!%p196_p10)   ;;  %v742_v1 = vmov (!%p196_p10), 0.0   ;;  %v655_v2 = vld [vmem:[%s907_s2 + $0x8] sm:$0xff] (!%p196_p10)   ;;  %vm743_vm0 = vmmov (!%p196_p10), 0   ;;  %p230_p11 = scmp.lt.s32.totalorder (!%p196_p10), %s732_s18, 1  ;;  %v744_v3 = vmov (!%p196_p10), 0  }
   0xf   : > { %199 = sbr.rel (%p196_p10) target bundleno = 968 (0x3c8), region = 36  ;;  %579 = vmatprep.subr.bf16.mxu0 (!%p196_p10), %v742_v1  ;;  %587 = vmatprep.subr.bf16.mxu1 (!%p196_p10), %v742_v1  ;;  %vm278_vm1 = vcmask (!%p196_p10), 261120   ;;  %v568_v7 = vld [vmem:[%s908_s3] ss:$0 sm:$0xff] (!%p196_p10)  ;;  %vm249_vm2 = vcmask (!%p196_p10), 3072   ;;  %v745_v14 = vmov (!%p196_p10), -inf  }
  0x10   : > { %580 = vmatpush3.bf16.msra.mxu0 (!%p196_p10), %v654_v0  ;;  %583 = vmatprep.mubr.msk.bf16.mxu0 (!%p196_p10), %vm743_vm0, %v742_v1  ;;  %250 = vst.msk [vmem:[#allocation2] sm:$0xf] (!%p196_p10), %vm249_vm2, %v745_v14  ;;  %251 = vst.msk [vmem:[#allocation3] sm:$0xf] (!%p196_p10), %vm249_vm2, %v742_v1  ;;  %vm362_vm3 = vcmask (!%p196_p10), 60416   ;;  %vm398_vm4 = vcmask (!%p196_p10), 1043456  }
  0x11   : > { %581 = vmatprep.subr.bf16.mxu0 (!%p196_p10), %v742_v1  ;;  %652 = vset.pattern.permute.xlu0 (!%p196_p10), %v744_v3  ;;  %vm252_vm5 = vcmask (!%p196_p10), 257024   ;;  %vm394_vm6 = vcmask (!%p196_p10), 64512   ;;  %s227_s26 = sand.u32 (!%p196_p10), 1, %s724_s16   ;;  %s571_s30 = sshll.u32 (!%p196_p10), %s732_s18, 6 }
  0x12   : > { %653 = vset.pattern.permute.xlu1 (!%p196_p10), %v744_v3  ;;  %589 = vmatprep.mubr.msk.bf16.mxu1 (!%p196_p10), %vm743_vm0, %v742_v1  ;;  %253 = vst.msk [vmem:[#allocation4] sm:$0xf] (!%p196_p10), %vm252_vm5, %v742_v1  ;;  %s562_s29 = sshll.u32 (!%p196_p10), %s227_s26, 2  ;;  %s459_s10 = scalar_lea.sflag (!%p196_p10), [#allocation6], %s227_s26 }
  0x13   : > { %s229_s5 = scalar_lea.vmem (!%p196_p10), [#allocation5], %s562_s29 }
  0x14   : > { %582 = vmatpush3.bf16.msra.mxu0 (!%p196_p10), %v655_v2  ;;  %s472_s6 = sshll.u32 (!%p196_p10), %s229_s5, 4  ;;  %s859_s6 = int_to_ptr.vmem [resolvable:$true] %s472_s6 }
  0x15   : > { %s662_s11 = scalar_lea.vmem (!%p196_p10), %s859_s6, 64 }
  0x16   : > { %s231_s7 = scalar_select %p230_p11, %s732_s18, 1 }
  0x17   : > { %v361_v17 = vld [vmem:[#allocation2] sm:$0xf]  ;;  %v378_v30 = vld [vmem:[#allocation3] sm:$0xf]  ;;  %p663_p12 = scmp.ne.s32.totalorder %s859_s6, %s662_s11  ;;  %s746_s18 = smov [#allocation5]  }
  0x18   : > { %s563_s8 = sshll.u32 %s231_s7, 2  ;;  %s564_s9 = sshll.u32 %s231_s7, 3 }
  0x19   : > { %s236_s12 = scalar_lea.vmem %s905_s0, %s563_s8  ;;  %s243_s21 = scalar_lea.vmem %s906_s1, %s564_s9  ;;  %v386_v36 = vld [vmem:[#allocation4] sm:$0xf] }
  0x1a   : > { %v259_v4 = vld [vmem:[%s236_s12] sm:$0xf]  ;;  %s857_s9 = scalar_lea.hbm %s909_s4, %s571_s30  ;;  %p664_p13 = pnand %p663_p12, %p812_p4 }
  0x1b   : > { %v260_v5 = vld [vmem:[%s243_s21] sm:$0xff]  ;;  %584 = vmatmul.mubr.msk.bf16.vlgmr.msra.gmra.mrb[0].mxu0 %vm278_vm1, %v259_v4  ;;  %v399_v22 = vsel %vm398_vm4, %v259_v4, 0  ;;  %s666_s12 = sshll.u32 %s746_s18, 4  ;;  %s667_s12 = int_to_ptr.vmem [resolvable:$false] %s666_s12 }
  0x1c   : > { %263 = vperm.xlu0 %652, %v260_v5   ;;  %588 = vmatpush3.bf16.msra.mxu1 %v399_v22  ;;  %p665_p0 = pneg %p664_p13  ;;  %s668_s13 = scalar_lea.vmem %s667_s12, 128 }
  0x1d   : > { %p669_p1 = scmp.lt.s32.totalorder %s859_s6, %s667_s12  ;;  %p670_p2 = scmp.lt.s32.totalorder %s668_s13, %s662_s11 }
  0x1f   : > { %p671_p3 = por %p670_p2, %p669_p1 }
  0x21   : > { %p672_p5 = pnand %p671_p3, %p665_p0 }
  0x9b   : > { %v264_v6 = vpop.permute.xlu0 %263 }
  0xee   : > { %v316_v8 = vpop.f32.mrb[0].mxu0 }
  0xef   : > { %v317_v9 = vadd.f32 %v316_v8, %v264_v6  ;;  %v585_v10 = vpop.f32.mrb[1].mxu0 }
  0xf0   : > { %v319_v11 = vpop.f32.mrb[2].mxu0 }
  0xf1   : > { %v328_v12 = vadd.f32 %v568_v7, %v317_v9  ;;  %v586_v13 = vpop.f32.mrb[3].mxu0 }
  0xf3   : > { %329 = vxpose.xlu0.b32.start.end [1/1] (short) (narrow) %v328_v12, 8 }
 0x173   : > { %v345_v15 = vpop.trf.xlu0 }
 0x174   : > { %v363_v16 = vsel %vm362_vm3, %v345_v15, -inf }
 0x175   : > { %364 = vmax.xlane.f32.xlu1 %v363_v16 }
 0x202   : > { %v365_v18 = vpop.xlane.xlu1 %364 }
 0x203   : > { %v366_v19 = vmax.f32 %v361_v17, %v365_v18 }
 0x205   : > { %v367_v20 = vsub.f32 %v361_v17, %v366_v19  ;;  %444 = vst.msk [vmem:[#allocation2] sm:$0xf] %vm249_vm2, %v366_v19  ;;  %372 = vperm.xlu1 %653, %v366_v19  }
 0x207   : > { %v368_v21 = vmul.f32 1.442695, %v367_v20 }
 0x209   : > { %656 = vpow2.f32 %v368_v21 }
 0x213   : > { %v657_v23 = vpop.eup %656 }
 0x214   : > { %389 = vperm.xlu0 %652, %v657_v23   ;;  %v379_v31 = vmul.f32 %v657_v23, %v378_v30 }
 0x284   : > { %v373_v24 = vpop.permute.xlu1 %372 }
 0x285   : > { %v375_v25 = vsub.f32 %v345_v15, %v373_v24 }
 0x287   : > { %v376_v26 = vmul.f32 1.442695, %v375_v25 }
 0x289   : > { %658 = vpow2.f32 %v376_v26 }
 0x293   : > { %v659_v27 = vpop.eup %658  ;;  %v390_v37 = vpop.permute.xlu0 %389 }
 0x294   : > { %v380_v28 = vsel %vm362_vm3, %v659_v27, 0.0  ;;  %v393_v29 = vpack.c.bf16 %v659_v27, %v659_v27  ;;  %v392_v38 = vmul.f32 %v390_v37, %v386_v36 }
 0x295   : > { %381 = vadd.xlane.f32.xlu1 %v380_v28 }
 0x296   : > { %590 = vmatmul.mubr.msk.bf16.vlgmr.msra.gmra.mrb[0].mxu1 %vm394_vm6, %v393_v29 }
 0x322   : > { %v382_v32 = vpop.xlane.xlu1 %381 }
 0x323   : > { %v383_v33 = vadd.f32 %v382_v32, %v379_v31 }
 0x325   : > { %385 = vst.msk [vmem:[#allocation3] sm:$0xf] %vm249_vm2, %v383_v33 }
 0x32c   : > { %v448_v34 = vld [vmem:[#allocation3] sm:$0xf] }
 0x32d   : > { %660 = vrcp.f32 %v448_v34 }
 0x337   : > { %v661_v35 = vpop.eup %660 }
 0x338   : > { %453 = vperm.xlu1 %653, %v661_v35  }
 0x369   : > { %v435_v39 = vpop.f32.mrb[0].mxu1 }
 0x36a   : > { %v441_v40 = vadd.f32 %v435_v39, %v392_v38  ;;  %v591_v41 = vpop.f32.mrb[1].mxu1 }
 0x36b   : > { %v438_v42 = vpop.f32.mrb[2].mxu1 }
 0x36c   : > { %443 = vst.msk [vmem:[#allocation4] sm:$0xf] %vm252_vm5, %v441_v40  ;;  %v592_v43 = vpop.f32.mrb[3].mxu1 }
 0x373   : > { %v450_v44 = vld [vmem:[#allocation4] sm:$0xf] }
 0x3b7   : > { %v454_v45 = vpop.permute.xlu1 %453 }
 0x3b8   : > { %v456_v46 = vmul.f32 %v454_v45, %v450_v44 }
 0x3ba   : > { %457 = vst.msk [vmem:[%s229_s5] sm:$0xf] %vm252_vm5, %v456_v46 }
 0x3bb   : > { %675 = shalt.err (!%p672_p5)
}
 0x3bc   : > { %s676_s14 = scalar_lea.hbm %s857_s9, 64  ;;  %s680_s24 = scalar_lea.hbm %s909_s4, 128 }
 0x3bd   : > { %p677_p6 = scmp.ne.s32.totalorder %s857_s9, %s676_s14  ;;  %p681_p10 = scmp.lt.u32.totalorder %s857_s9, %s909_s4 }
 0x3be   : > { %p682_p11 = scmp.lt.u32.totalorder %s680_s24, %s676_s14  ;;  %p684_p13 = scmp.lt.u32.totalorder %s676_s14, %s857_s9 }
 0x3bf   : > { %p678_p7 = pnand %p677_p6, %p812_p4 }
 0x3c0   : > { %p683_p12 = por %p682_p11, %p681_p10 }
 0x3c1   : > { %p679_p9 = pneg %p678_p7 }
 0x3c2   : > { %p685_p0 = por %p684_p13, %p683_p12 }
 0x3c4   : > { %p686_p1 = pnand %p685_p0, %p679_p9 }
 0x3c6   : > { %689 = shalt.err (!%p686_p1)
}
 0x3c7   : > { %593 = dma.vmem_to_hbm [thread:$0]  (%p812_p4), %s859_s6, 64, %s857_s9, %s459_s10  }
 0x3c8 PF: > { %p599_p2 = scmp.ge.s32.totalorder %s740_s20, 2  ;;  %s484_s30 = sand.u32 1, %s720_s15  }
 0x3c9   : > { %s485_s5 = scalar_lea.sflag [#allocation6], %s484_s30 }
 0x3ca   : > { %p596_p3 = pnand %p599_p2, %p819_p8 }
 0x3cc   : > { %715 = dma.done.wait (!%p596_p3), %s485_s5, 64  }
 0x3cd   : > { %717 = vsyncadd (!%p596_p3), %s485_s5, 4294967232  ;;  %s17_s20 = sadd.s32 1, %s740_s20   ;;  %s912_s15 = smov %s724_s16 }
 0x3ce   : > { %p14_p5 = scmp.ge.s32.totalorder %s17_s20, 4   ;;  %s913_s16 = smov %s728_s17 }
 0x3cf   : > { %s914_s17 = smov %s825_s28  ;;  %s915_s18 = smov %s736_s19 }
 0x3d0   : > { %s916_s19 = smov %s918_s23  ;;  %16 = sbr.rel (!%p14_p5) target bundleno = 4 (0x4), region = 82 }
 0x3d7   :  { %490 = vsyncpa [#allocation6], 1 }
 0x3d8   :  { %492 = vsyncpa [#allocation6 + $0x1], 1 }

</bundles_post_ra>
